<compile_context>
chip_gen: v7x
topology: tpu7x:2x2x1
jax: 0.10.0
libtpu: 0.0.40
codegen_flags: <defaults>
</compile_context>

<pallas_src>
import math
import functools

import jax
import jax.numpy as jnp
from jax.experimental import pallas as pl
from jax.experimental.pallas import tpu as pltpu


def make_pe_buffer(d_model: int, max_len: int) -> jnp.ndarray:
    """Deterministic sinusoidal positional-encoding buffer, shape (max_len, 1, d_model)."""
    position = jnp.arange(max_len, dtype=jnp.float32)[:, None]                  # (L, 1)
    div_term = jnp.exp(
        jnp.arange(0, d_model, 2, dtype=jnp.float32) * (-math.log(10000.0) / d_model)
    )                                                                            # (D/2,)
    pe = jnp.zeros((max_len, d_model), dtype=jnp.float32)
    pe = pe.at[:, 0::2].set(jnp.sin(position * div_term))
    pe = pe.at[:, 1::2].set(jnp.cos(position * div_term))
    return pe[:, None, :]                                                        # (L, 1, D)


# ----------------------------------------------------------------------------------
# Kernels (2-D lane-dense tiles: x/out are (blk_s, B*D); pe is (blk_s, D))
# ----------------------------------------------------------------------------------

def _pe_add_kernel(x_ref, pe_ref, o_ref, *, batch: int):
    """Eval mode: y = x + pe (dropout is identity)."""
    pe_bd = jnp.tile(pe_ref[...], (1, batch))            # (blk_s, D) -> (blk_s, B*D)
    o_ref[...] = (x_ref[...].astype(jnp.float32) + pe_bd).astype(o_ref.dtype)


def _uniform01_from_counter(ctr_u32, seed_mix: int):
    """lowbias32-style integer hash -> uniform float in [0, 1). Plain VPU ops only."""
    h = ctr_u32 + jnp.uint32(seed_mix)
    h = (h ^ (h >> 16)) * jnp.uint32(0x7FEB352D)
    h = (h ^ (h >> 15)) * jnp.uint32(0x846CA68B)
    h = h ^ (h >> 16)
    # Top-ish 24 bits -> [0, 1).  uint32 -> int32 is a cheap convert (value < 2^24).
    return (h >> 8).astype(jnp.int32).astype(jnp.float32) * jnp.float32(1.0 / (1 << 24))


def _pe_add_dropout_kernel(x_ref, pe_ref, o_ref, *,
                           batch: int, p: float, seed_mix: int, blk_s: int, bd: int):
    """Train mode: y = inverted_dropout(x + pe, p)."""
    pe_bd = jnp.tile(pe_ref[...], (1, batch))            # hoisted above dropout math
    y = x_ref[...].astype(jnp.float32) + pe_bd

    # Counter-based PRNG keyed on the global element index: portable (no pltpu.prng_*),
    # and the mask does not depend on blk_s / grid decomposition.
    shape = y.shape
    row0 = pl.program_id(0) * blk_s
    rows = jax.lax.broadcasted_iota(jnp.int32, shape, 0) + row0
    cols = jax.lax.broadcasted_iota(jnp.int32, shape, 1)
    ctr = rows.astype(jnp.uint32) * jnp.uint32(bd) + cols.astype(jnp.uint32)
    r = _uniform01_from_counter(ctr, seed_mix)

    keep = r >= jnp.float32(p)                           # P(keep) = 1 - p
    inv_keep = jnp.float32(1.0 / (1.0 - p))
    o_ref[...] = jnp.where(keep, y * inv_keep, jnp.float32(0.0)).astype(o_ref.dtype)


# ----------------------------------------------------------------------------------
# Wrapper
# ----------------------------------------------------------------------------------

def _vmem_capacity_bytes() -> int:
    try:
        info = pltpu.get_tpu_info()
        return int(getattr(info, "vmem_capacity_bytes", 64 << 20))
    except Exception:
        return 64 << 20  # conservative (v7x per-TC VMEM)


def _pick_tiling(S: int, row_bytes: int, blk_s, sublane: int, training: bool):
    """Choose seq tile size and a scoped-VMEM limit sized for the live footprint."""
    vmem_cap = _vmem_capacity_bytes()
    # Live tiles: x/pe/out double-buffered (~6) + dropout temporaries (bits, f32 y, mask).
    tiles_live = 6 + (4 if training else 0)

    if blk_s is None:
        # ~1-4 MiB tiles already sit at the HBM roofline knee; bigger buys nothing.
        tile_budget = max(min(4 << 20, vmem_cap // (8 * tiles_live)), 1 << 20)
        blk_s = tile_budget // max(row_bytes, 1)
    blk_s = int(blk_s)

    # v7x: leave >= 2 grid steps so ("parallel",) can split the seq axis across both
    # TensorCores (harmless on single-TC v5e/v6e).
    blk_s = min(blk_s, max(pl.cdiv(S, 2), sublane))
    # Clamp any (user-supplied) blk_s so the footprint can never exceed ~half of VMEM.
    max_rows = max(((vmem_cap // 2) - (2 << 20)) // (tiles_live * max(row_bytes, 1)), sublane)
    blk_s = min(blk_s, max_rows)

    blk_s = max((blk_s // sublane) * sublane, sublane)   # dtype-aware sublane packing
    blk_s = min(blk_s, S)                                # full extent if S is small

    footprint = tiles_live * blk_s * row_bytes + (2 << 20)
    vmem_limit = int(min(max(footprint, 8 << 20), vmem_cap // 2))
    return blk_s, vmem_limit


def rpn_positional_encoding(
    x: jnp.ndarray,
    pe: jnp.ndarray,
    *,
    p: float = 0.1,
    training: bool = False,
    seed: int = 0,
    blk_s=None,
) -> jnp.ndarray:
    """x: (S, B, D); pe: (max_len, 1, D).  Returns dropout(x + pe[:S])."""
    S, B, D = x.shape
    assert pe.shape[0] >= S and pe.shape[-1] == D

    out_dtype = jnp.promote_types(x.dtype, pe.dtype)     # torch keeps fp32 pe & promotes

    if training and p >= 1.0:
        # PyTorch zeroes everything at p == 1 (1/(1-p) is undefined).
        return jnp.zeros((S, B, D), dtype=out_dtype)

    BD = B * D
    itemsize = jnp.dtype(x.dtype).itemsize
    sublane = max(8, 32 // itemsize)                      # 8 f32, 16 bf16, 32 int8/fp8
    apply_dropout = bool(training) and p > 0.0

    blk_s, vmem_limit = _pick_tiling(S, BD * itemsize, blk_s, sublane, apply_dropout)
    grid = (pl.cdiv(S, blk_s),)

    # Lane-dense layout for the streamed arrays (free, contiguous reshape).  pe stays
    # tiny ((S, D), fp32) and is tiled across batch *inside* the kernel instead of being
    # materialized at (S, B*D) in HBM (saves ~2 full array passes of HBM traffic).
    x2 = x.reshape(S, BD)
    pe_s = pe.reshape(pe.shape[0], D)[:S]

    compiler_params = pltpu.CompilerParams(
        dimension_semantics=("parallel",),                # independent seq tiles
        vmem_limit_bytes=vmem_limit,
    )
    in_specs = [
        pl.BlockSpec((blk_s, BD), lambda i: (i, 0)),      # x tile
        pl.BlockSpec((blk_s, D), lambda i: (i, 0)),       # pe tile (small, per-seq-row)
    ]
    out_spec = pl.BlockSpec((blk_s, BD), lambda i: (i, 0))
    out_shape = jax.ShapeDtypeStruct((S, BD), out_dtype)

    if not apply_dropout:
        kernel = functools.partial(_pe_add_kernel, batch=B)
    else:
        seed_mix = ((int(seed) * 0x9E3779B9) ^ 0x85EBCA6B) & 0xFFFFFFFF
        kernel = functools.partial(
            _pe_add_dropout_kernel,
            batch=B, p=float(p), seed_mix=seed_mix, blk_s=int(blk_s), bd=BD,
        )

    out2 = pl.pallas_call(
        kernel,
        out_shape=out_shape,
        grid=grid,
        in_specs=in_specs,
        out_specs=out_spec,
        compiler_params=compiler_params,
    )(x2, pe_s)

    return out2.reshape(S, B, D)


if __name__ == "__main__":
    # Small shapes consistent with the module: seq=8, batch=2, d_model=32, max_len=16.
    S, B, D, MAX_LEN = 8, 2, 32, 16
    P_DROP = 0.5

    key = jax.random.PRNGKey(0)
    x = jax.random.normal(key, (S, B, D), dtype=jnp.float32)
    pe = make_pe_buffer(D, MAX_LEN)

    ref = x + pe[:S]

    # --- Eval mode (dropout = identity), matching module.eval() ---
    out_eval = jax.block_until_ready(
        rpn_positional_encoding(x, pe, p=P_DROP, training=False)
    )
    assert out_eval.shape == (S, B, D)
    assert jnp.allclose(out_eval, ref, atol=1e-6), "eval-mode mismatch vs reference"

    # --- Train mode: structural check (each element is 0 or (x+pe)/(1-p)) ---
    out_train = jax.block_until_ready(
        rpn_positional_encoding(x, pe, p=P_DROP, training=True, seed=123)
    )
    scaled = ref / (1.0 - P_DROP)
    is_zero = jnp.isclose(out_train, 0.0, atol=1e-6)
    is_kept = jnp.isclose(out_train, scaled, rtol=1e-5, atol=1e-5)
    assert bool(jnp.all(is_zero | is_kept)), "train-mode dropout structure mismatch"
    n_zero = int(jnp.sum(is_zero))
    assert 0 < n_zero < out_train.size, "dropout mask degenerate"

    print("KERNEL_OK")
</pallas_src>

<mosaic_0001>
module attributes {stable_mosaic.version = 11 : i64} {
  func.func @_pe_add_kernel(%arg0: i32, %arg1: memref<8x64xf32, #tpu.memory_space<vmem>>, %arg2: memref<8x32xf32, #tpu.memory_space<vmem>>, %arg3: memref<8x64xf32, #tpu.memory_space<vmem>>) attributes {dimension_semantics = [#tpu.dimension_semantics<parallel>], iteration_bounds = array<i64: 1>, scalar_prefetch = 0 : i64, scratch_operands = 0 : i64, tpu.core_type = #tpu.core_type<tc>, window_params = [{transform_indices = @transform_0, window_bounds = array<i64: 8, 64>}, {transform_indices = @transform_1, window_bounds = array<i64: 8, 32>}, {transform_indices = @transform_2, window_bounds = array<i64: 8, 64>}]} {
    %c0 = arith.constant 0 : index
    %c0_0 = arith.constant 0 : index
    %0 = vector.load %arg2[%c0, %c0_0] : memref<8x32xf32, #tpu.memory_space<vmem>>, vector<8x32xf32>
    %1 = tpu.concatenate %0, %0 in 1 : vector<8x32xf32>, vector<8x32xf32> -> vector<8x64xf32>
    %c0_1 = arith.constant 0 : index
    %c0_2 = arith.constant 0 : index
    %2 = vector.load %arg1[%c0_1, %c0_2] : memref<8x64xf32, #tpu.memory_space<vmem>>, vector<8x64xf32>
    %3 = arith.addf %2, %1 : vector<8x64xf32>
    %c0_3 = arith.constant 0 : index
    %c0_4 = arith.constant 0 : index
    %4 = vector.load %arg3[%c0_3, %c0_4] : memref<8x64xf32, #tpu.memory_space<vmem>>, vector<8x64xf32>
    tpu.vector_store %arg3[%c0_3, %c0_4], %3 {strides = array<i32>} : memref<8x64xf32, #tpu.memory_space<vmem>>, vector<8x64xf32>,
    return
  }
  func.func @transform_0(%arg0: i32) -> (i32, i32) {
    %c0_i32 = arith.constant 0 : i32
    %c0_i32_0 = arith.constant 0 : i32
    return %arg0, %c0_i32 : i32, i32
  }
  func.func @transform_1(%arg0: i32) -> (i32, i32) {
    %c0_i32 = arith.constant 0 : i32
    %c0_i32_0 = arith.constant 0 : i32
    return %arg0, %c0_i32 : i32, i32
  }
  func.func @transform_2(%arg0: i32) -> (i32, i32) {
    %c0_i32 = arith.constant 0 : i32
    %c0_i32_0 = arith.constant 0 : i32
    return %arg0, %c0_i32 : i32, i32
  }
}

</mosaic_0001>

<bundles_post_ra>
// kernel: tpu_custom_call.1
= control target key start
LH: loop header
LB: loop body
LE: loop exit
PB: predicated region body
PF: predicated region fallthrough
CT: control target
= control target key end

     0   :  { %7 = vsyncpa [#allocation3], 0  ;;  %s194_s0 = inlined_call_operand.hbm [shape: f32[8,64], index: 0, kind: input, shape index: {}]   ;;  %s195_s1 = inlined_call_operand.hbm [shape: f32[8,32], index: 1, kind: input, shape index: {}]   ;;  %s196_s2 = inlined_call_operand.hbm [shape: f32[8,64], index: 2, kind: output, shape index: {}]  }
   0x1   :  { %8 = vsyncpa [#allocation6], 0 }
   0x2   :  { %9 = vsyncpa [#allocation4], 0  ;;  %s139_s9 = smov [#allocation2]   ;;  %s140_s11 = smov [#allocation5]  }
   0x3   :  { %s16_s10 = sshll.u32 %s139_s9, 4  ;;  %s26_s12 = sshll.u32 %s140_s11, 4  ;;  %s17_s10 = int_to_ptr.vmem [resolvable:$true] %s16_s10  ;;  %s27_s12 = int_to_ptr.vmem [resolvable:$true] %s26_s12 }
   0x4   :  { %s67_s15 = scalar_lea.hbm %s194_s0, 128 }
   0x5   :  { %p68_p0 = scmp.ne.s32.totalorder %s194_s0, %s67_s15  ;;  %p71_p1 = scmp.lt.u32.totalorder %s67_s15, %s194_s0 }
   0x7   :  { %p73_p2 = pnand %p71_p1, %p68_p0 }
   0x9   :  { %76 = shalt.err (!%p73_p2)
}
   0xa   :  { %s77_s20 = scalar_lea.vmem %s17_s10, 128  ;;  %p82_p4 = scmp.lt.s32.totalorder %s17_s10, %s17_s10 }
   0xb   :  { %p78_p3 = scmp.ne.s32.totalorder %s17_s10, %s77_s20  ;;  %p83_p5 = scmp.lt.s32.totalorder %s77_s20, %s77_s20 }
   0xd   :  { %p84_p6 = por %p83_p5, %p82_p4 }
   0xf   :  { %p85_p7 = pnand %p84_p6, %p78_p3 }
  0x11   :  { %88 = shalt.err (!%p85_p7)
}
  0x12   :  { %19 = dma.hbm_to_vmem [thread:$0]  %s194_s0, 128, %s17_s10, [#allocation3]  }
  0x13   :  { %s89_s25 = scalar_lea.hbm %s195_s1, 128 }
  0x14   :  { %p90_p8 = scmp.ne.s32.totalorder %s195_s1, %s89_s25  ;;  %p93_p9 = scmp.lt.u32.totalorder %s89_s25, %s195_s1 }
  0x16   :  { %p95_p10 = pnand %p93_p9, %p90_p8 }
  0x18   :  { %98 = shalt.err (!%p95_p10)
}
  0x19   :  { %s99_s30 = scalar_lea.vmem %s27_s12, 128  ;;  %p104_p12 = scmp.lt.s32.totalorder %s27_s12, %s27_s12 }
  0x1a   :  { %p100_p11 = scmp.ne.s32.totalorder %s27_s12, %s99_s30  ;;  %p105_p13 = scmp.lt.s32.totalorder %s99_s30, %s99_s30 }
  0x1c   :  { %p106_p0 = por %p105_p13, %p104_p12 }
  0x1e   :  { %p107_p1 = pnand %p106_p0, %p100_p11 }
  0x20   :  { %110 = shalt.err (!%p107_p1)
}
  0x21   :  { %29 = dma.hbm_to_vmem [thread:$0]  %s195_s1, 128, %s27_s12, [#allocation6]  }
  0x22   :  { %133 = dma.done.wait [#allocation3], 128  }
  0x23   :  { %134 = vsyncadd [#allocation3], 4294967168 }
  0x24   :  { %135 = dma.done.wait [#allocation6], 128  }
  0x25   :  { %136 = vsyncadd [#allocation6], 4294967168  ;;  %v36_v0 = vld [vmem:[#allocation5] sm:$0xff]  ;;  %s141_s4 = smov 32   ;;  %vm41_vm0 = vcmask 261120   ;;  %v43_v1 = vld [vmem:[#allocation2] sm:$0xff] }
  0x26   :  { %38 = vrot.lane.b32.xlu0 %v36_v0, %s141_s4  ;;  %s142_s5 = smov [#allocation7]   ;;  %vm45_vm1 = vcmask 523264  }
  0x27   :  { %s53_s6 = sshll.u32 %s142_s5, 4  ;;  %s54_s6 = int_to_ptr.vmem [resolvable:$true] %s53_s6 }
  0x28   :  { %s111_s7 = scalar_lea.vmem %s54_s6, 128  ;;  %p116_p3 = scmp.lt.s32.totalorder %s54_s6, %s54_s6 }
  0x29   :  { %p112_p2 = scmp.ne.s32.totalorder %s54_s6, %s111_s7  ;;  %p117_p4 = scmp.lt.s32.totalorder %s111_s7, %s111_s7 }
  0x2b   :  { %p118_p5 = por %p117_p4, %p116_p3 }
  0x2d   :  { %p119_p6 = pnand %p118_p5, %p112_p2 }
  0x98   :  { %v39_v2 = vpop.permute.xlu0 %38 }
  0x99   :  { %v42_v3 = vsel %vm41_vm0, %v36_v0, %v39_v2 }
  0x9a   :  { %v44_v4 = vadd.f32 %v43_v1, %v42_v3 }
  0x9c   :  { %46 = vst.msk [vmem:[#allocation7] sm:$0xff] %vm45_vm1, %v44_v4 }
  0x9d   :  { %122 = shalt.err (!%p119_p6)
}
  0x9e   :  { %s123_s9 = scalar_lea.hbm %s196_s2, 128 }
  0x9f   :  { %p124_p7 = scmp.ne.s32.totalorder %s196_s2, %s123_s9  ;;  %p127_p8 = scmp.lt.u32.totalorder %s123_s9, %s196_s2 }
  0xa1   :  { %p129_p9 = pnand %p127_p8, %p124_p7 }
  0xa3   :  { %132 = shalt.err (!%p129_p9)
}
  0xa4   :  { %56 = dma.vmem_to_hbm [thread:$0]  %s54_s6, 128, %s196_s2, [#allocation4]  }
  0xa5   :  { %137 = dma.done.wait [#allocation4], 128  }
  0xa6   :  { %138 = vsyncadd [#allocation4], 4294967168 }
  0xa7   :  { %60 = vsyncpa [#allocation3], 1 }
  0xa8   :  { %61 = vsyncpa [#allocation6], 1 }
  0xa9   :  { %62 = vsyncpa [#allocation4], 1 }

</bundles_post_ra>
